<compile_context>
chip_gen: v7x
topology: tpu7x:2x2x1
jax: 0.10.0
libtpu: 0.0.40
codegen_flags: <defaults>
</compile_context>

<pallas_src>
import math

import jax
import jax.numpy as jnp
from jax.experimental import pallas as pl
from jax.experimental.pallas import tpu as pltpu


def _sae_kernel(x_ref, w_enc_ref, w_dec_ref, b_enc_ref, b_dec_ref, o_ref, acc_ref):
    # x_ref:     (TB, D_in)      w_enc_ref: (D_in, TH)    w_dec_ref: (TH, D_in)
    # b_enc_ref: (1, TH)         b_dec_ref: (1, D_in)
    # o_ref:     (TB, D_in)      acc_ref:   (TB, D_in) f32 scratch
    h = pl.program_id(1)

    @pl.when(h == 0)
    def _init():
        acc_ref[...] = jnp.zeros_like(acc_ref)

    x = x_ref[...]
    b_dec_f32 = b_dec_ref[...].astype(jnp.float32)  # (1, D_in)

    # Center the input.  Keep MXU operands in the weights' native dtype so
    # bf16 weights are not blown up into f32 copies in VMEM/vregs.
    if x.dtype == w_enc_ref.dtype == b_dec_ref.dtype:
        xc = x - b_dec_ref[...]
    else:
        xc = (x.astype(jnp.float32) - b_dec_f32).astype(w_enc_ref.dtype)

    # Encoder tile: relu(xc @ W_enc[:, h-tile]) + b_enc[h-tile]
    pre = jnp.dot(xc, w_enc_ref[...], preferred_element_type=jnp.float32)
    latent = jnp.maximum(pre, 0.0) + b_enc_ref[...].astype(jnp.float32)

    # Decoder partial sum over the hidden (reduction) axis.
    acc_ref[...] += jnp.dot(latent.astype(w_dec_ref.dtype), w_dec_ref[...],
                            preferred_element_type=jnp.float32)

    @pl.when(h == pl.num_programs(1) - 1)
    def _finalize():
        # decoder_bias added exactly once, on the final hidden tile.
        o_ref[...] = (acc_ref[...] + b_dec_f32).astype(o_ref.dtype)


def _pick_tile(dim, target, granule):
    """Largest divisor of `dim` that is <= target, preferring granule-aligned."""
    if dim <= target:
        return dim
    best = 1
    t = target
    while t >= 1:
        if dim % t == 0:
            if t % granule == 0:
                return t
            if best == 1:
                best = t
        t -= 1
    return best


def sparse_autoencoder_forward(x, w_enc, w_dec, b_enc, b_dec, *, tb=None, th=None):
    """x: [B, D_in]; w_enc: [D_in, H]; w_dec: [H, D_in]; b_enc: [H]; b_dec: [D_in]."""
    B, d_in = x.shape
    d_in_e, H = w_enc.shape
    assert d_in_e == d_in and w_dec.shape == (H, d_in)
    assert b_enc.shape == (H,) and b_dec.shape == (d_in,)

    # Batch tile: MXU M dim (256-aligned fills the 256-wide v6e/v7x MXU and
    # gives >=2 "parallel" grid iterations for megacore on realistic batches).
    # Hidden tile: bounds VMEM so neither full weight must be resident.
    if tb is None:
        tb = _pick_tile(B, 256, 8)
    if th is None:
        th = _pick_tile(H, 512, 128)
    assert B % tb == 0 and H % th == 0

    b_enc2 = b_enc.reshape(1, H)
    b_dec2 = b_dec.reshape(1, d_in)

    grid = (B // tb, H // th)

    x_bytes = jnp.dtype(x.dtype).itemsize
    w_bytes = jnp.dtype(w_enc.dtype).itemsize

    # Double-buffered pipeline footprint + f32 accumulator (rough, with headroom),
    # capped below v7x's 64 MiB physical VMEM.
    vmem_needed = 2 * (tb * d_in * x_bytes            # x tile
                       + d_in * th * w_bytes          # W_enc tile
                       + th * d_in * w_bytes          # W_dec tile
                       + 8 * th * w_bytes             # b_enc tile (sublane padded)
                       + 8 * d_in * w_bytes           # b_dec
                       + tb * d_in * x_bytes)         # out tile
    vmem_needed += tb * d_in * 4                      # accumulator
    vmem_limit = int(min(max(2 * vmem_needed, 32 * 1024 * 1024),
                         60 * 1024 * 1024))

    cost = pl.CostEstimate(
        flops=4 * B * d_in * H,
        transcendentals=0,
        bytes_accessed=(2 * B * d_in * x_bytes                     # x + out
                        + (B // tb) * 2 * d_in * H * w_bytes       # weights per batch tile
                        + (H + d_in) * w_bytes))                   # biases

    return pl.pallas_call(
        _sae_kernel,
        out_shape=jax.ShapeDtypeStruct((B, d_in), x.dtype),
        grid_spec=pltpu.PrefetchScalarGridSpec(
            num_scalar_prefetch=0,
            grid=grid,
            in_specs=[
                pl.BlockSpec((tb, d_in), lambda b, h: (b, 0)),   # x batch tile
                pl.BlockSpec((d_in, th), lambda b, h: (0, h)),   # W_enc hidden tile
                pl.BlockSpec((th, d_in), lambda b, h: (h, 0)),   # W_dec hidden tile
                pl.BlockSpec((1, th), lambda b, h: (0, h)),      # encoder bias tile
                pl.BlockSpec((1, d_in), lambda b, h: (0, 0)),    # decoder bias (invariant)
            ],
            out_specs=pl.BlockSpec((tb, d_in), lambda b, h: (b, 0)),
            scratch_shapes=[pltpu.VMEM((tb, d_in), jnp.float32)],
        ),
        compiler_params=pltpu.CompilerParams(
            dimension_semantics=("parallel", "arbitrary"),
            vmem_limit_bytes=vmem_limit),
        cost_estimate=cost,
    )(x, w_enc, w_dec, b_enc2, b_dec2)


def _kaiming_uniform(key, out_features, in_features, dtype=jnp.float32):
    # PyTorch kaiming_uniform_ (a=0, fan_in mode): bound = sqrt(6 / fan_in)
    bound = math.sqrt(6.0 / in_features)
    return jax.random.uniform(key, (out_features, in_features), dtype,
                              minval=-bound, maxval=bound)


def reference_forward(x, w_enc, w_dec, b_enc, b_dec):
    xc = x - b_dec
    latent = jnp.maximum(xc @ w_enc, 0.0) + b_enc
    return latent @ w_dec + b_dec


if __name__ == "__main__":
    input_dim = 256
    hidden_dim = 256
    batch = 16

    key = jax.random.PRNGKey(0)
    k_x, k_we, k_wd, k_be, k_bd = jax.random.split(key, 5)

    # PyTorch-shaped weights: encoder.weight (H, D_in), decoder.weight (D_in, H)
    w_enc_torch = _kaiming_uniform(k_we, hidden_dim, input_dim)
    w_dec_torch = _kaiming_uniform(k_wd, input_dim, hidden_dim)

    # Kernel layout: [in_features, out_features]
    w_enc = w_enc_torch.T            # (D_in, H)
    w_dec = w_dec_torch.T            # (H, D_in)
    # Nonzero biases (learned parameters at runtime) to exercise both bias paths.
    b_enc = 0.1 * jax.random.normal(k_be, (hidden_dim,), jnp.float32)
    b_dec = 0.1 * jax.random.normal(k_bd, (input_dim,), jnp.float32)

    x = jax.random.normal(k_x, (batch, input_dim), jnp.float32)

    # Small demo tiles (real sizes pick 256-aligned tiles automatically);
    # tb=8 < B and th=128 < H so both grid axes iterate, exercising the
    # parallel batch axis and the hidden-dim accumulator path.
    out = sparse_autoencoder_forward(x, w_enc, w_dec, b_enc, b_dec, tb=8, th=128)
    out = jax.block_until_ready(out)

    ref = reference_forward(x, w_enc, w_dec, b_enc, b_dec)
    assert out.shape == (batch, input_dim)
    assert jnp.allclose(out, ref, atol=2e-4, rtol=2e-4), "mismatch vs reference"

    print("KERNEL_OK")
</pallas_src>

<mosaic_0001>
module attributes {stable_mosaic.version = 11 : i64} {
  func.func @_sae_kernel(%arg0: i32, %arg1: i32, %arg2: memref<8x256xf32, #tpu.memory_space<vmem>>, %arg3: memref<256x128xf32, #tpu.memory_space<vmem>>, %arg4: memref<128x256xf32, #tpu.memory_space<vmem>>, %arg5: memref<1x128xf32, #tpu.memory_space<vmem>>, %arg6: memref<1x256xf32, #tpu.memory_space<vmem>>, %arg7: memref<8x256xf32, #tpu.memory_space<vmem>>, %arg8: memref<8x256xf32, #tpu.memory_space<vmem>>) attributes {dimension_semantics = [#tpu.dimension_semantics<parallel>, #tpu.dimension_semantics<arbitrary>], iteration_bounds = array<i64: 2, 2>, scalar_prefetch = 0 : i64, scratch_operands = 1 : i64, tpu.core_type = #tpu.core_type<tc>, window_params = [{transform_indices = @transform_0, window_bounds = array<i64: 8, 256>}, {transform_indices = @transform_1, window_bounds = array<i64: 256, 128>}, {transform_indices = @transform_2, window_bounds = array<i64: 128, 256>}, {transform_indices = @transform_3, window_bounds = array<i64: 1, 128>}, {pipeline_mode = #tpu.pipeline_mode<synchronous>, transform_indices = @transform_4, window_bounds = array<i64: 1, 256>}, {transform_indices = @transform_5, window_bounds = array<i64: 8, 256>}]} {
    %c0_i32 = arith.constant 0 : i32
    %0 = arith.cmpi eq, %arg1, %c0_i32 : i32
    %1 = arith.extui %0 : i1 to i32
    %c0_i32_0 = arith.constant 0 : i32
    %2 = arith.cmpi ne, %1, %c0_i32_0 : i32
    scf.if %2 {
      %cst_19 = arith.constant 0.000000e+00 : f32
      %23 = vector.broadcast %cst_19 : f32 to vector<8x256xf32>
      %c0_20 = arith.constant 0 : index
      %c0_21 = arith.constant 0 : index
      %24 = vector.load %arg8[%c0_20, %c0_21] : memref<8x256xf32, #tpu.memory_space<vmem>>, vector<8x256xf32>
      tpu.vector_store %arg8[%c0_20, %c0_21], %23 {strides = array<i32>} : memref<8x256xf32, #tpu.memory_space<vmem>>, vector<8x256xf32>,
    } else {
    }
    %c0 = arith.constant 0 : index
    %c0_1 = arith.constant 0 : index
    %3 = vector.load %arg2[%c0, %c0_1] : memref<8x256xf32, #tpu.memory_space<vmem>>, vector<8x256xf32>
    %c0_2 = arith.constant 0 : index
    %c0_3 = arith.constant 0 : index
    %4 = vector.load %arg6[%c0_2, %c0_3] : memref<1x256xf32, #tpu.memory_space<vmem>>, vector<1x256xf32>
    %c0_4 = arith.constant 0 : index
    %c0_5 = arith.constant 0 : index
    %5 = vector.load %arg6[%c0_4, %c0_5] : memref<1x256xf32, #tpu.memory_space<vmem>>, vector<1x256xf32>
    %6 = vector.broadcast %5 : vector<1x256xf32> to vector<8x256xf32>
    %7 = arith.subf %3, %6 : vector<8x256xf32>
    %c0_6 = arith.constant 0 : index
    %c0_7 = arith.constant 0 : index
    %8 = vector.load %arg3[%c0_6, %c0_7] : memref<256x128xf32, #tpu.memory_space<vmem>>, vector<256x128xf32>
    %cst = arith.constant dense<0.000000e+00> : vector<8x128xf32>
    %9 = tpu.matmul %7, %8, %cst {dimension_numbers = #tpu.dot_dimension_numbers<[1], [0], [0], [1], [0, 0, 1, 1], [], []>} : vector<8x256xf32>, vector<256x128xf32>, vector<8x128xf32> -> vector<8x128xf32>
    %cst_8 = arith.constant 0.000000e+00 : f32
    %10 = vector.broadcast %cst_8 : f32 to vector<8x128xf32>
    %11 = arith.maximumf %9, %10 : vector<8x128xf32>
    %c0_9 = arith.constant 0 : index
    %c0_10 = arith.constant 0 : index
    %12 = vector.load %arg5[%c0_9, %c0_10] : memref<1x128xf32, #tpu.memory_space<vmem>>, vector<1x128xf32>
    %13 = vector.broadcast %12 : vector<1x128xf32> to vector<8x128xf32>
    %14 = arith.addf %11, %13 : vector<8x128xf32>
    %c0_11 = arith.constant 0 : index
    %c0_12 = arith.constant 0 : index
    %15 = vector.load %arg8[%c0_11, %c0_12] : memref<8x256xf32, #tpu.memory_space<vmem>>, vector<8x256xf32>
    %c0_13 = arith.constant 0 : index
    %c0_14 = arith.constant 0 : index
    %16 = vector.load %arg4[%c0_13, %c0_14] : memref<128x256xf32, #tpu.memory_space<vmem>>, vector<128x256xf32>
    %cst_15 = arith.constant dense<0.000000e+00> : vector<8x256xf32>
    %17 = tpu.matmul %14, %16, %cst_15 {dimension_numbers = #tpu.dot_dimension_numbers<[1], [0], [0], [1], [0, 0, 1, 1], [], []>} : vector<8x128xf32>, vector<128x256xf32>, vector<8x256xf32> -> vector<8x256xf32>
    %18 = arith.addf %15, %17 : vector<8x256xf32>
    %c0_16 = arith.constant 0 : index
    %c0_17 = arith.constant 0 : index
    %19 = vector.load %arg8[%c0_16, %c0_17] : memref<8x256xf32, #tpu.memory_space<vmem>>, vector<8x256xf32>
    tpu.vector_store %arg8[%c0_16, %c0_17], %18 {strides = array<i32>} : memref<8x256xf32, #tpu.memory_space<vmem>>, vector<8x256xf32>,
    %c1_i32 = arith.constant 1 : i32
    %20 = arith.cmpi eq, %arg1, %c1_i32 : i32
    %21 = arith.extui %20 : i1 to i32
    %c0_i32_18 = arith.constant 0 : i32
    %22 = arith.cmpi ne, %21, %c0_i32_18 : i32
    scf.if %22 {
      %c0_19 = arith.constant 0 : index
      %c0_20 = arith.constant 0 : index
      %23 = vector.load %arg8[%c0_19, %c0_20] : memref<8x256xf32, #tpu.memory_space<vmem>>, vector<8x256xf32>
      %24 = vector.broadcast %4 : vector<1x256xf32> to vector<8x256xf32>
      %25 = arith.addf %23, %24 : vector<8x256xf32>
      %c0_21 = arith.constant 0 : index
      %c0_22 = arith.constant 0 : index
      %26 = vector.load %arg7[%c0_21, %c0_22] : memref<8x256xf32, #tpu.memory_space<vmem>>, vector<8x256xf32>
      tpu.vector_store %arg7[%c0_21, %c0_22], %25 {strides = array<i32>} : memref<8x256xf32, #tpu.memory_space<vmem>>, vector<8x256xf32>,
    } else {
    }
    return
  }
  func.func @transform_0(%arg0: i32, %arg1: i32) -> (i32, i32) {
    %c0_i32 = arith.constant 0 : i32
    %c0_i32_0 = arith.constant 0 : i32
    return %arg0, %c0_i32 : i32, i32
  }
  func.func @transform_1(%arg0: i32, %arg1: i32) -> (i32, i32) {
    %c0_i32 = arith.constant 0 : i32
    %c0_i32_0 = arith.constant 0 : i32
    return %c0_i32, %arg1 : i32, i32
  }
  func.func @transform_2(%arg0: i32, %arg1: i32) -> (i32, i32) {
    %c0_i32 = arith.constant 0 : i32
    %c0_i32_0 = arith.constant 0 : i32
    return %arg1, %c0_i32 : i32, i32
  }
  func.func @transform_3(%arg0: i32, %arg1: i32) -> (i32, i32) {
    %c0_i32 = arith.constant 0 : i32
    %c0_i32_0 = arith.constant 0 : i32
    return %c0_i32, %arg1 : i32, i32
  }
  func.func @transform_4(%arg0: i32, %arg1: i32) -> (i32, i32) {
    %c0_i32 = arith.constant 0 : i32
    %c0_i32_0 = arith.constant 0 : i32
    %c0_i32_1 = arith.constant 0 : i32
    return %c0_i32, %c0_i32_0 : i32, i32
  }
  func.func @transform_5(%arg0: i32, %arg1: i32) -> (i32, i32) {
    %c0_i32 = arith.constant 0 : i32
    %c0_i32_0 = arith.constant 0 : i32
    return %arg0, %c0_i32 : i32, i32
  }
}

</mosaic_0001>

<bundles_post_ra>
// kernel: tpu_custom_call.1
= control target key start
LH: loop header
LB: loop body
LE: loop exit
PB: predicated region body
PF: predicated region fallthrough
CT: control target
= control target key end

     0   :  { %s1694_s0 = inlined_call_operand.hbm [shape: f32[16,256], index: 0, kind: input, shape index: {}]   ;;  %s1695_s1 = inlined_call_operand.hbm [shape: f32[256,256], index: 1, kind: input, shape index: {}]   ;;  %s1696_s2 = inlined_call_operand.hbm [shape: f32[256,256], index: 2, kind: input, shape index: {}]   ;;  %s1697_s3 = inlined_call_operand.vmem [shape: f32[1,256], index: 3, kind: input, shape index: {}]   ;;  %s1698_s4 = inlined_call_operand.vmem [shape: f32[1,256], index: 4, kind: input, shape index: {}]   ;;  %s1699_s5 = inlined_call_operand.hbm [shape: f32[16,256], index: 5, kind: output, shape index: {}]  }
   0x1   :  { %1711 = sst [smem:[#allocation20_spill]] %s1695_s1 }
   0x2   :  { %1712 = sst [smem:[#allocation21_spill]] %s1697_s3 }
   0x3   :  { %1713 = sst [smem:[#allocation22_spill]] %s1698_s4 }
   0x4   :  { %1714 = sst [smem:[#allocation23_spill]] %s1699_s5 }
   0x5   :  { %10 = vsyncpa [#allocation4], 0 }
   0x6   :  { %12 = vsyncpa [#allocation4 + $0x1], 0 }
   0x7   :  { %13 = vsyncpa [#allocation7], 0 }
   0x8   :  { %15 = vsyncpa [#allocation7 + $0x1], 0 }
   0x9   :  { %16 = vsyncpa [#allocation5], 0 }
   0xa   :  { %18 = vsyncpa [#allocation5 + $0x1], 0  ;;  %s1250_s18 = smov 0   ;;  %s1252_s19 = smov 0  }
   0xb   :  { %s1254_s20 = smov 0   ;;  %s1256_s21 = smov 0  }
   0xc   :  { %s1258_s22 = smov 0   ;;  %s1260_s23 = smov 0  }
   0xd   :  { %s1262_s24 = smov 0   ;;  %s1264_s25 = smov 0  }
   0xe   :  { %s1266_s26 = smov 0   ;;  %s1268_s27 = smov 0  }
   0xf   :  { %s1270_s28 = smov 0  }
  0x10 LB: > { %1715 = sst [smem:[#allocation13_spill]] %s1188_s23  ;;  %p51_p0 = scmp.eq.s32.totalorder %s1208_s28, 0  ;;  %s1208_s28 = sphi %s1270_s28, %s24_s28   ;;  %s1204_s27 = sphi %s1268_s27, %s1751_s27   ;;  %s1200_s26 = sphi %s1266_s26, %s1758_s26   ;;  %s1196_s25 = sphi %s1264_s25, %s1749_s25   ;;  %s1192_s24 = sphi %s1262_s24, %s1757_s24   ;;  %s1188_s23 = sphi %s1260_s23, %s1748_s23   ;;  %s1184_s22 = sphi %s1258_s22, %s1756_s22   ;;  %s1180_s21 = sphi %s1256_s21, %s1755_s21   ;;  %s1176_s20 = sphi %s1254_s20, %s1754_s20   ;;  %s1172_s19 = sphi %s1252_s19, %s1753_s19   ;;  %s1168_s18 = sphi %s1250_s18, %s1752_s18  }
  0x11   : > { %1716 = sst [smem:[#allocation14_spill]] %s1196_s25  ;;  %p76_p1 = scmp.ne.s32.totalorder %s1176_s20, %s1172_s19 }
  0x12   : > { %1717 = sst [smem:[#allocation15_spill]] %s1204_s27  ;;  %p1700_p2 = scmp.lt.s32.totalorder %s1208_s28, 4 }
  0x13   : > { %s227_s30 = sand.u32 1, %s1208_s28   ;;  %p78_p3 = por %p76_p1, %p51_p0 }
  0x14   : > { %s229_s6 = sand.u32 1, %s1176_s20   ;;  %s753_s7 = sshll.u32 %s1200_s26, 7 }
  0x15   : > { %s1315_s8 = sshll.u32 %s229_s6, 8  ;;  %s1718_s1 = sld [smem:[#allocation20_spill]] }
  0x16   : > { %p1324_p4 = pnand %p1700_p2, %p78_p3  ;;  %s231_s13 = scalar_lea.vmem [#allocation6], %s1315_s8 }
  0x17   : > { %s237_s14 = sshll.u32 %s231_s13, 4  ;;  %s1331_s15 = scalar_lea.sflag [#allocation7], %s227_s30  ;;  %s1329_s14 = int_to_ptr.vmem [resolvable:$true] %s237_s14 }
  0x18   : > { %p1704_p6 = pneg %p1324_p4 }
  0x1b   : > { %s1320_s11 = scalar_lea.hbm %s1718_s1, %s753_s7  ;;  %s997_s7 = scalar_lea.hbm %s1718_s1, 8192 }
  0x1c   : > { %s992_s16 = scalar_lea.hbm %s1320_s11, 4096  ;;  %p998_p9 = scmp.lt.u32.totalorder %s1320_s11, %s1718_s1 }
  0x1d   : > { %p993_p5 = scmp.ne.s32.totalorder %s1320_s11, %s992_s16  ;;  %p999_p10 = scmp.lt.u32.totalorder %s997_s7, %s992_s16 }
  0x1e   : > { %p1001_p12 = scmp.lt.u32.totalorder %s992_s16, %s1320_s11 }
  0x1f   : > { %p995_p7 = pnand %p1704_p6, %p993_p5  ;;  %p1000_p11 = por %p999_p10, %p998_p9 }
  0x21   : > { %p996_p8 = pneg %p995_p7  ;;  %p1002_p13 = por %p1001_p12, %p1000_p11 }
  0x23   : > { %p1003_p1 = pnand %p1002_p13, %p996_p8 }
  0x25   : > { %1006 = shalt.err (!%p1003_p1)
}
  0x26   : > { %s1007_s30 = scalar_lea.vmem %s1329_s14, 4096  ;;  %s1210_s13 = smov [#allocation6]  }
  0x27   : > { %p1008_p3 = scmp.ne.s32.totalorder %s1329_s14, %s1007_s30  ;;  %s1012_s17 = sshll.u32 %s1210_s13, 4  ;;  %s1013_s17 = int_to_ptr.vmem [resolvable:$false] %s1012_s17 }
  0x28   : > { %s1014_s6 = scalar_lea.vmem %s1013_s17, 8192  ;;  %p1015_p2 = scmp.lt.s32.totalorder %s1329_s14, %s1013_s17 }
  0x29   : > { %p1010_p5 = pnand %p1008_p3, %p1704_p6  ;;  %p1016_p9 = scmp.lt.s32.totalorder %s1014_s6, %s1007_s30 }
  0x2b   : > { %p1011_p7 = pneg %p1010_p5  ;;  %p1017_p10 = por %p1016_p9, %p1015_p2 }
  0x2d   : > { %p1018_p11 = pnand %p1017_p10, %p1011_p7 }
  0x2f   : > { %1021 = shalt.err (!%p1018_p11)
}
  0x30   : > { %s1701_s16 = smov 256   ;;  %s1212_s7 = smov 128  }
  0x31   : > { %s1213_s9 = smov 8   ;;  %p758_p2 = scmp.ge.s32.totalorder %s1208_s28, 1 }
  0x32   : > { %888 = dma.hbm_to_vmem [thread:$0]  (!%p1324_p4), %s1320_s11, 4096, %s1329_s14, %s1331_s15, %s1701_s16, %s1212_s7, %s1213_s9  }
  0x33   : > { %p273_p8 = scmp.lt.s32.totalorder %s1208_s28, 5  ;;  %s1367_s30 = sadd.s32 4294967295, %s1208_s28  }
  0x34   : > { %s746_s13 = sadd.s32 4294967294, %s1208_s28   ;;  %s33_s17 = sadd.s32 1, %s1200_s26 }
  0x35   : > { %p1362_p12 = pnand %p758_p2, %p273_p8  ;;  %p34_p13 = scmp.ge.s32.totalorder %s33_s17, 2 }
  0x36   : > { %s36_s6 = sadd.s32 1, %s1204_s27  ;;  %s43_s11 = sadd.s32 1, %s1188_s23 }
  0x37   : > { %s1720_s10 = scalar_select %p1362_p12, 1, 0 }
  0x38   : > { %p50_p1 = scmp.ne.s32.totalorder %s1188_s23, %s1184_s22  ;;  %s1760_s17 = smov (%p34_p13, %s33_s17), 0 }
  0x39   : > { %1721 = sst [smem:[#allocation16_spill]] %s1760_s17  ;;  %s1762_s6 = smov (!%p34_p13, %s36_s6), %s1204_s27 }
  0x3a   : > { %p1383_p3 = por %p51_p0, %p50_p1  ;;  %p56_p5 = scmp.ne.s32.totalorder %s1184_s22, %s1180_s21 }
  0x3b   : > { %p38_p7 = scmp.ge.s32.totalorder %s1762_s6, 2  ;;  %p57_p9 = scmp.eq.s32.totalorder %s1367_s30, 0 }
  0x3c   : > { %s66_s7 = ssub.s32 %s1200_s26, %s1760_s17  ;;  %p82_p10 = scmp.ne.s32.totalorder %s1172_s19, %s1168_s18 }
  0x3d   : > { %s1764_s6 = smov (%p38_p7, %s1762_s6), 0  ;;  %p1399_p11 = por %p57_p9, %p56_p5 }
  0x3e   : > { %1723 = sst [smem:[#allocation17_spill]] %s1764_s6  ;;  %p67_p0 = scmp.eq.s32.totalorder %s66_s7, 0 }
  0x3f   : > { %s1724_s9 = scalar_select %p1399_p11, 1, 0 }
  0x40   : > { %s40_s16 = ssub.s32 %s1204_s27, %s1764_s6  ;;  %p1405_p2 = por %p82_p10, %p57_p9 }
  0x41   : > { %p41_p8 = scmp.eq.s32.totalorder %s40_s16, 0  ;;  %p179_p13 = scmp.eq.s32.totalorder %s1367_s30, 3 }
  0x42   : > { %s1725_s29 = scalar_select %p1405_p2, 1, 0 }
  0x43   : > { %s1726_s1 = sadd.s32 1, %s1176_s20  ;;  %p1421_p7 = por %p179_p13, %p50_p1 }
  0x44   : > { %s1413_s18 = scalar_select %p67_p0, %s1176_s20, %s1726_s1  }
  0x45   : > { %s1416_s17 = scalar_select %p41_p8, %s1188_s23, %s43_s11  }
  0x46   : > { %1727 = sst [smem:[#allocation18_spill]] %s1413_s18  ;;  %p185_p6 = scmp.eq.s32.totalorder %s746_s13, 3 }
  0x47   : > { %1728 = sst [smem:[#allocation19_spill]] %s1416_s17  ;;  %s208_s25 = sand.u32 1, %s1188_s23  }
  0x48   : > { %s1729_s5 = scalar_select %p1421_p7, 1, 0 }
  0x49   : > { %s771_s7 = sshll.u32 %s1204_s27, 8  ;;  %p1430_p9 = por %p185_p6, %p56_p5 }
  0x4a   : > { %s749_s16 = sshll.u32 %s208_s25, 4  ;;  %s1437_s1 = scalar_lea.hbm %s1694_s0, %s771_s7 }
  0x4b   : > { %s1730_s6 = scalar_select %p1430_p9, 1, 0 }
  0x4c   : > { %p1731_p10 = scmp.lt.s32.totalorder %s1208_s28, 4  ;;  %s212_s11 = scalar_lea.vmem [#allocation3], %s749_s16 }
  0x4d   : > { %s220_s27 = sshll.u32 %s212_s11, 4  ;;  %s209_s17 = scalar_lea.sflag [#allocation4], %s208_s25  ;;  %s1447_s27 = int_to_ptr.vmem [resolvable:$true] %s220_s27 }
  0x4e   : > { %p1443_p1 = pnand %p1731_p10, %p1383_p3  ;;  %s1022_s3 = scalar_lea.hbm %s1437_s1, 256 }
  0x4f   : > { %p1023_p6 = scmp.ne.s32.totalorder %s1437_s1, %s1022_s3  ;;  %s1027_s7 = scalar_lea.hbm %s1694_s0, 512 }
  0x50   : > { %p1024_p5 = pneg %p1443_p1  ;;  %p1028_p3 = scmp.lt.u32.totalorder %s1437_s1, %s1694_s0 }
  0x51   : > { %p1029_p13 = scmp.lt.u32.totalorder %s1027_s7, %s1022_s3  ;;  %p1031_p9 = scmp.lt.u32.totalorder %s1022_s3, %s1437_s1 }
  0x52   : > { %p1025_p0 = pnand %p1024_p5, %p1023_p6 }
  0x53   : > { %p1030_p10 = por %p1029_p13, %p1028_p3 }
  0x54   : > { %p1026_p8 = pneg %p1025_p0 }
  0x55   : > { %p1032_p7 = por %p1031_p9, %p1030_p10 }
  0x57   : > { %p1033_p2 = pnand %p1032_p7, %p1026_p8 }
  0x59   : > { %1036 = shalt.err (!%p1033_p2)
}
  0x5a   : > { %s1037_s25 = scalar_lea.vmem %s1447_s27, 256  ;;  %s1214_s16 = smov [#allocation3]  }
  0x5b   : > { %p1038_p6 = scmp.ne.s32.totalorder %s1447_s27, %s1037_s25  ;;  %s1042_s11 = sshll.u32 %s1214_s16, 4  ;;  %s1043_s11 = int_to_ptr.vmem [resolvable:$false] %s1042_s11 }
  0x5c   : > { %s1044_s23 = scalar_lea.vmem %s1043_s11, 512  ;;  %p1045_p12 = scmp.lt.s32.totalorder %s1447_s27, %s1043_s11 }
  0x5d   : > { %p1040_p0 = pnand %p1038_p6, %p1024_p5  ;;  %p1046_p3 = scmp.lt.s32.totalorder %s1044_s23, %s1037_s25 }
  0x5f   : > { %p1041_p11 = pneg %p1040_p0  ;;  %p1047_p13 = por %p1046_p3, %p1045_p12 }
  0x61   : > { %p1048_p9 = pnand %p1047_p13, %p1041_p11 }
  0x63   : > { %1051 = shalt.err (!%p1048_p9)
}
  0x64   : > { %885 = dma.hbm_to_vmem [thread:$0]  (!%p1443_p1), %s1437_s1, 256, %s1447_s27, %s209_s17  }
  0x65   : > { %s773_s18 = sshll.u32 %s1200_s26, 12  ;;  %s251_s3 = scalar_lea.vmem [#allocation8], %s1315_s8 }
  0x66   : > { %s259_s4 = sshll.u32 %s251_s3, 4  ;;  %s1479_s16 = scalar_lea.hbm %s1696_s2, %s773_s18  ;;  %s1481_s4 = int_to_ptr.vmem [resolvable:$true] %s259_s4 }
  0x67   : > { %s1052_s13 = scalar_lea.hbm %s1479_s16, 4096  ;;  %p1733_p11 = pneg %p1324_p4 }
  0x68   : > { %p1053_p12 = scmp.ne.s32.totalorder %s1479_s16, %s1052_s13  ;;  %s1057_s17 = scalar_lea.hbm %s1696_s2, 8192 }
  0x69   : > { %p1058_p1 = scmp.lt.u32.totalorder %s1479_s16, %s1696_s2  ;;  %p1059_p5 = scmp.lt.u32.totalorder %s1057_s17, %s1052_s13 }
  0x6a   : > { %p1055_p2 = pnand %p1053_p12, %p1733_p11  ;;  %p1061_p10 = scmp.lt.u32.totalorder %s1052_s13, %s1479_s16 }
  0x6b   : > { %p1060_p8 = por %p1059_p5, %p1058_p1 }
  0x6c   : > { %p1056_p7 = pneg %p1055_p2 }
  0x6d   : > { %p1062_p6 = por %p1061_p10, %p1060_p8 }
  0x6f   : > { %p1063_p0 = pnand %p1062_p6, %p1056_p7 }
  0x71   : > { %1066 = shalt.err (!%p1063_p0)
}
  0x72   : > { %s1067_s11 = scalar_lea.vmem %s1481_s4, 4096  ;;  %p1734_p13 = pmov %p1733_p11 }
  0x73   : > { %p1068_p3 = scmp.ne.s32.totalorder %s1481_s4, %s1067_s11  ;;  %s1215_s23 = smov [#allocation8]  }
  0x74   : > { %s1072_s18 = sshll.u32 %s1215_s23, 4  ;;  %s1073_s18 = int_to_ptr.vmem [resolvable:$false] %s1072_s18 }
  0x75   : > { %p1070_p9 = pnand %p1068_p3, %p1734_p13  ;;  %s1074_s3 = scalar_lea.vmem %s1073_s18, 8192 }
  0x76   : > { %p1075_p11 = scmp.lt.s32.totalorder %s1481_s4, %s1073_s18  ;;  %p1076_p2 = scmp.lt.s32.totalorder %s1074_s3, %s1067_s11 }
  0x77   : > { %p1071_p12 = pneg %p1070_p9 }
  0x78   : > { %p1077_p1 = por %p1076_p2, %p1075_p11 }
  0x7a   : > { %p1078_p5 = pnand %p1077_p1, %p1071_p12 }
  0x7c   : > { %1081 = shalt.err (!%p1078_p5)
}
  0x7d   : > { %s1216_s14 = smov 16   ;;  %s1735_s7 = smov 256  }
  0x7e   : > { %891 = dma.hbm_to_vmem [thread:$0]  (!%p1324_p4), %s1479_s16, 4096, %s1481_s4, %s1331_s15, %s1735_s7, %s1735_s7, %s1216_s14  }
  0x7f   : > { %p1736_p7 = scmp.ne.s32.totalorder %s1720_s10, 0 }
  0x80   : > { %s1512_s13 = sand.u32 (!%p1736_p7), 1, %s1184_s22   ;;  %p1737_p8 = scmp.ne.s32.totalorder (!%p1736_p7), %s1724_s9, 0 }
  0x81   : > { %277 = sbr.rel (%p1736_p7) target bundleno = 661 (0x295), region = 40  ;;  %s759_s27 = sshll.u32 (!%p1736_p7), %s1512_s13, 4 }
  0x82   : > { %s280_s8 = scalar_lea.sflag (!%p1736_p7), [#allocation4], %s1512_s13  ;;  %s1516_s17 = scalar_lea.vmem (!%p1736_p7), [#allocation3], %s759_s27 }
  0x88   : > { %1155 = dma.done.wait (%p1737_p8), %s280_s8, 256  }
  0x89   : > { %1157 = vsyncadd (%p1737_p8), %s280_s8, 4294967040  ;;  %s288_s12 = sand.u32 1, %s1367_s30   ;;  %s290_s15 = sand.u32 1, %s1172_s19  }
  0x8a   : > { %s760_s10 = sshll.u32 %s290_s15, 8  ;;  %s289_s4 = scalar_lea.sflag [#allocation7], %s288_s12 }
  0x8b   : > { %s1524_s16 = scalar_lea.vmem [#allocation6], %s760_s10  ;;  %p1738_p4 = scmp.ne.s32.totalorder %s1725_s29, 0 }
  0x8d   : > { %1159 = dma.done.wait (%p1738_p4), %s289_s4, 8192  }
  0x8e   : > { %1161 = vsyncadd (%p1738_p4), %s289_s4, 4294959104  ;;  %p342_p10 = scmp.lt.s32.totalorder %s1192_s24, 1  ;;  %s1739_s11 = sld [smem:[#allocation21_spill]] }
  0x8f   : > { %s1538_s23 = scalar_lea.vmem [#allocation8], %s760_s10  ;;  %s1540_s18 = scalar_lea.vmem [#allocation9], %s759_s27 }
  0x90   : > { %s1532_s1 = scalar_select %p342_p10, %s1192_s24, 1 }
  0x91   : > { %p763_p6 = scmp.ne.s32.totalorder %s1192_s24, 0 }
  0x92   : > { %v1217_v0 = vmov (!%p763_p6), 0.0  }
  0x93   : > { %348 = sbr.rel (%p763_p6) target bundleno = 154 (0x9a), region = 56  ;;  %349 = vst [vmem:[#allocation2] sm:$0xff] (!%p763_p6), %v1217_v0  ;;  %350 = vst [vmem:[#allocation2 + $0x8] sm:$0xff] (!%p763_p6), %v1217_v0 }
  0x94   : > { %s344_s30 = scalar_lea.vmem %s1739_s11, %s1532_s1 }
  0x9a PF: > { %v383_v1 = vld [vmem:[%s1524_s16 + $0x80] sm:$0xff]  ;;  %v384_v2 = vld [vmem:[%s1524_s16 + $0x88] sm:$0xff]  ;;  %v355_v4 = vlaneseq  ;;  %v385_v7 = vld [vmem:[%s1524_s16 + $0x90] sm:$0xff]  ;;  %s1740_s14 = sld [smem:[#allocation22_spill]]  ;;  %p765_p0 = scmp.ne.s32.totalorder %s1192_s24, 1 }
  0x9b   : > { %v367_v3 = vld [vmem:[%s1524_s16] sm:$0xff]  ;;  %v810_v5 = vpack.c.bf16 %v384_v2, %v383_v1  ;;  %v368_v6 = vld [vmem:[%s1524_s16 + $0x8] sm:$0xff]  ;;  %v386_v8 = vld [vmem:[%s1524_s16 + $0x98] sm:$0xff] }
  0x9c   : > { %v812_v9 = vpack.c.bf16 %v368_v6, %v367_v3  ;;  %v814_v10 = vpack.c.bf16 %v386_v8, %v385_v7  ;;  %v369_v11 = vld [vmem:[%s1524_s16 + $0x10] sm:$0xff]  ;;  %v370_v12 = vld [vmem:[%s1524_s16 + $0x18] sm:$0xff]  ;;  %v387_v13 = vld [vmem:[%s1524_s16 + $0xa0] sm:$0xff]  ;;  %v1553_v16 = vshrl.u32 %v355_v4, 7 }
  0x9d   : > { %811 = vmatprep.subr.bf16.mxu0 %v810_v5  ;;  %v388_v14 = vld [vmem:[%s1524_s16 + $0xa8] sm:$0xff]  ;;  %v816_v15 = vpack.c.bf16 %v370_v12, %v369_v11  ;;  %v371_v18 = vld [vmem:[%s1524_s16 + $0x20] sm:$0xff]  ;;  %v389_v20 = vld [vmem:[%s1524_s16 + $0xb0] sm:$0xff] }
  0x9e   : > { %813 = vmatpush3.bf16.msra.mxu0 %v812_v9  ;;  %v818_v17 = vpack.c.bf16 %v388_v14, %v387_v13  ;;  %v372_v19 = vld [vmem:[%s1524_s16 + $0x28] sm:$0xff]  ;;  %v390_v21 = vld [vmem:[%s1524_s16 + $0xb8] sm:$0xff]  ;;  %v361_v23 = vsub.s32 1, %v1553_v16  ;;  %v373_v25 = vld [vmem:[%s1524_s16 + $0x30] sm:$0xff] }
  0x9f   : > { %815 = vmatprep.subr.bf16.mxu0 %v814_v10  ;;  %v820_v22 = vpack.c.bf16 %v372_v19, %v371_v18  ;;  %v822_v24 = vpack.c.bf16 %v390_v21, %v389_v20  ;;  %v374_v26 = vld [vmem:[%s1524_s16 + $0x38] sm:$0xff]  ;;  %v391_v27 = vld [vmem:[%s1524_s16 + $0xc0] sm:$0xff]  ;;  %v392_v28 = vld [vmem:[%s1524_s16 + $0xc8] sm:$0xff]  ;;  %v357_v10 = vsub.s32 0, %v1553_v16 }
  0xa0   : > { %v375_v29 = vld [vmem:[%s1524_s16 + $0x40] sm:$0xff]  ;;  %v376_v30 = vld [vmem:[%s1524_s16 + $0x48] sm:$0xff]  ;;  %v1570_v32 = vld [vmem:[%s1740_s14] sm:$0x3]  ;;  %v824_v34 = vpack.c.bf16 %v374_v26, %v373_v25  ;;  %v826_v39 = vpack.c.bf16 %v392_v28, %v391_v27 }
  0xa1   : > { %v352_v31 = vld [vmem:[%s1516_s17 + $0x8] sm:$0xff]  ;;  %v1574_v35 = vrot.slane %v1570_v32, %v361_v23  ;;  %v480_v37 = vld [vmem:[%s1538_s23] sm:$0xff]  ;;  %v482_v38 = vld [vmem:[%s1538_s23 + $0x10] sm:$0xff]  ;;  %v828_v52 = vpack.c.bf16 %v376_v30, %v375_v29  ;;  %v358_v16 = vrot.slane %v1570_v32, %v357_v10 }
  0xa2   : > { %817 = vmatpush3.bf16.msra.mxu0 %v816_v15  ;;  %v481_v33 = vld [vmem:[%s1538_s23 + $0x8] sm:$0xff]  ;;  %v483_v36 = vld [vmem:[%s1538_s23 + $0x18] sm:$0xff]  ;;  %v393_v40 = vld [vmem:[%s1524_s16 + $0xd0] sm:$0xff]  ;;  %v844_v42 = vpack.c.bf16 %v482_v38, %v480_v37 }
  0xa3   : > { %819 = vmatprep.subr.bf16.mxu0 %v818_v17  ;;  %v842_v41 = vpack.c.bf16 %v483_v36, %v481_v33  ;;  %v485_v43 = vld [vmem:[%s1538_s23 + $0x28] sm:$0xff]  ;;  %v487_v44 = vld [vmem:[%s1538_s23 + $0x38] sm:$0xff]  ;;  %v366_v46 = vsub.f32 %v352_v31, %v1574_v35  ;;  %v484_v48 = vld [vmem:[%s1538_s23 + $0x20] sm:$0xff] }
  0xa4   : > { %v394_v45 = vld [vmem:[%s1524_s16 + $0xd8] sm:$0xff]  ;;  %v846_v47 = vpack.c.bf16 %v487_v44, %v485_v43  ;;  %v486_v49 = vld [vmem:[%s1538_s23 + $0x30] sm:$0xff]  ;;  %v489_v50 = vld [vmem:[%s1538_s23 + $0x48] sm:$0xff] }
  0xa5   : > { %843 = vmatprep.subr.bf16.mxu1 %v842_v41  ;;  %v491_v51 = vld [vmem:[%s1538_s23 + $0x58] sm:$0xff]  ;;  %463 = vmatprep.mubr.f32.mxu0 %v366_v46  ;;  %v830_v53 = vpack.c.bf16 %v394_v45, %v393_v40  ;;  %v377_v54 = vld [vmem:[%s1524_s16 + $0x50] sm:$0xff]  ;;  %v395_v56 = vld [vmem:[%s1524_s16 + $0xe0] sm:$0xff]  ;;  %v848_v57 = vpack.c.bf16 %v486_v49, %v484_v48  ;;  %v1218_v45 = vmov 0.0  }
  0xa6   : > { %821 = vmatpush3.bf16.msra.mxu0 %v820_v22  ;;  %v378_v55 = vld [vmem:[%s1524_s16 + $0x58] sm:$0xff]  ;;  %845 = vmatpush1.bf16.msra.mxu1 %v844_v42  ;;  %v396_v58 = vld [vmem:[%s1524_s16 + $0xe8] sm:$0xff]  ;;  %v850_v59 = vpack.c.bf16 %v491_v51, %v489_v50  ;;  %v488_v60 = vld [vmem:[%s1538_s23 + $0x40] sm:$0xff] }
  0xa7   : > { %823 = vmatprep.subr.bf16.mxu0 %v822_v24  ;;  %847 = vmatprep.subr.bf16.mxu1 %v846_v47  ;;  %v490_v61 = vld [vmem:[%s1538_s23 + $0x50] sm:$0xff]  ;;  %v493_v62 = vld [vmem:[%s1538_s23 + $0x68] sm:$0xff]  ;;  %v495_v63 = vld [vmem:[%s1538_s23 + $0x78] sm:$0xff]  ;;  %v832_v0 = vpack.c.bf16 %v378_v55, %v377_v54  ;;  %v834_v1 = vpack.c.bf16 %v396_v58, %v395_v56 }
  0xa8   : > { %v379_v2 = vld [vmem:[%s1524_s16 + $0x60] sm:$0xff]  ;;  %v380_v3 = vld [vmem:[%s1524_s16 + $0x68] sm:$0xff]  ;;  %v397_v4 = vld [vmem:[%s1524_s16 + $0xf0] sm:$0xff]  ;;  %v852_v5 = vpack.c.bf16 %v490_v61, %v488_v60  ;;  %v854_v7 = vpack.c.bf16 %v495_v63, %v493_v62  ;;  %576 = vmatprep.mubr.f32.mxu1 %v1218_v45 }
  0xa9   : > { %v398_v6 = vld [vmem:[%s1524_s16 + $0xf8] sm:$0xff]  ;;  %v492_v8 = vld [vmem:[%s1538_s23 + $0x60] sm:$0xff]  ;;  %v494_v9 = vld [vmem:[%s1538_s23 + $0x70] sm:$0xff]  ;;  %v836_v13 = vpack.c.bf16 %v380_v3, %v379_v2 }
  0xaa   : > { %825 = vmatpush3.bf16.msra.mxu0 %v824_v34  ;;  %849 = vmatpush1.bf16.msra.mxu1 %v848_v57  ;;  %v497_v11 = vld [vmem:[%s1538_s23 + $0x88] sm:$0xff]  ;;  %v499_v12 = vld [vmem:[%s1538_s23 + $0x98] sm:$0xff]  ;;  %v838_v14 = vpack.c.bf16 %v398_v6, %v397_v4  ;;  %v381_v15 = vld [vmem:[%s1524_s16 + $0x70] sm:$0xff]  ;;  %v856_v18 = vpack.c.bf16 %v494_v9, %v492_v8 }
  0xab   : > { %827 = vmatprep.subr.bf16.mxu0 %v826_v39  ;;  %851 = vmatprep.subr.bf16.mxu1 %v850_v59  ;;  %v382_v17 = vld [vmem:[%s1524_s16 + $0x78] sm:$0xff]  ;;  %v858_v19 = vpack.c.bf16 %v499_v12, %v497_v11  ;;  %v496_v20 = vld [vmem:[%s1538_s23 + $0x80] sm:$0xff]  ;;  %v498_v21 = vld [vmem:[%s1538_s23 + $0x90] sm:$0xff] }
  0xac   : > { %v501_v22 = vld [vmem:[%s1538_s23 + $0xa8] sm:$0xff]  ;;  %v503_v23 = vld [vmem:[%s1538_s23 + $0xb8] sm:$0xff]  ;;  %v840_v24 = vpack.c.bf16 %v382_v17, %v381_v15  ;;  %v351_v25 = vld [vmem:[%s1516_s17] sm:$0xff]  ;;  %v860_v26 = vpack.c.bf16 %v498_v21, %v496_v20 }
  0xad   : > { %v862_v27 = vpack.c.bf16 %v503_v23, %v501_v22  ;;  %v500_v28 = vld [vmem:[%s1538_s23 + $0xa0] sm:$0xff]  ;;  %v502_v29 = vld [vmem:[%s1538_s23 + $0xb0] sm:$0xff]  ;;  %v365_v30 = vsub.f32 %v351_v25, %v358_v16  ;;  %v505_v32 = vld [vmem:[%s1538_s23 + $0xc8] sm:$0xff] }
  0xae   : > { %829 = vmatpush3.bf16.msra.mxu0 %v828_v52  ;;  %853 = vmatpush1.bf16.msra.mxu1 %v852_v5  ;;  %v864_v31 = vpack.c.bf16 %v502_v29, %v500_v28  ;;  %v507_v33 = vld [vmem:[%s1538_s23 + $0xd8] sm:$0xff]  ;;  %v504_v36 = vld [vmem:[%s1538_s23 + $0xc0] sm:$0xff]  ;;  %v506_v37 = vld [vmem:[%s1538_s23 + $0xd0] sm:$0xff] }
  0xaf   : > { %831 = vmatprep.subr.bf16.mxu0 %v830_v53  ;;  %855 = vmatprep.subr.bf16.mxu1 %v854_v7  ;;  %v866_v34 = vpack.c.bf16 %v507_v33, %v505_v32  ;;  %v868_v38 = vpack.c.bf16 %v506_v37, %v504_v36  ;;  %v509_v39 = vld [vmem:[%s1538_s23 + $0xe8] sm:$0xff]  ;;  %v511_v40 = vld [vmem:[%s1538_s23 + $0xf8] sm:$0xff]  ;;  %v508_v42 = vld [vmem:[%s1538_s23 + $0xe0] sm:$0xff] }
  0xb0   : > { %v870_v41 = vpack.c.bf16 %v511_v40, %v509_v39  ;;  %v510_v43 = vld [vmem:[%s1538_s23 + $0xf0] sm:$0xff]  ;;  %v479_v53 = vld [vmem:[#allocation2 + $0x8] sm:$0xff] }
  0xb1   : > { %v872_v44 = vpack.c.bf16 %v510_v43, %v508_v42  ;;  %v764_v49 = vld [vmem:[%s344_s30] ss:$0 sm:$0xff] }
  0xb2   : > { %833 = vmatpush3.bf16.msra.mxu0 %v832_v0  ;;  %857 = vmatpush1.bf16.msra.mxu1 %v856_v18  ;;  %v478_v52 = vld [vmem:[#allocation2] sm:$0xff] }
  0xb3   : > { %835 = vmatprep.subr.bf16.mxu0 %v834_v1  ;;  %859 = vmatprep.subr.bf16.mxu1 %v858_v19 }
  0xb6   : > { %837 = vmatpush3.bf16.msra.mxu0 %v836_v13  ;;  %861 = vmatpush1.bf16.msra.mxu1 %v860_v26 }
  0xb7   : > { %839 = vmatprep.subr.bf16.mxu0 %v838_v14  ;;  %863 = vmatprep.subr.bf16.mxu1 %v862_v27 }
  0xba   : > { %841 = vmatpush3.bf16.msra.mxu0 %v840_v24  ;;  %865 = vmatpush1.bf16.msra.mxu1 %v864_v31 }
  0xbb   : > { %867 = vmatprep.subr.bf16.mxu1 %v866_v34 }
  0xbd   : > { %464 = vmatmul.mubr.f32.vlgmr.msra.gmra.mrb[0].mxu0 %v365_v30 }
  0xbe   : > { %869 = vmatpush1.bf16.msra.mxu1 %v868_v38 }
  0xbf   : > { %871 = vmatprep.subr.bf16.mxu1 %v870_v41 }
  0xc2   : > { %873 = vmatpush1.bf16.msra.mxu1 %v872_v44 }
 0x190   : > { %v807_v46 = vpop.f32.mrb[0].mxu0 }
 0x191   : > { %v808_v47 = vpop.f32.mrb[1].mxu0 }
 0x192   : > { %v809_v48 = vadd.f32 %v808_v47, %v807_v46 }
 0x194   : > { %v469_v50 = vmax.f32 %v809_v48, 0.0 }
 0x196   : > { %v477_v51 = vadd.f32 %v764_v49, %v469_v50 }
 0x198   : > { %577 = vmatmul.mubr.f32.vlgmr.msra.gmra.mrb[0].mxu1 %v477_v51 }
 0x269   : > { %590 = sbr.rel (%p765_p0) target bundleno = 634 (0x27a), region = 60 }
 0x26b   : > { %v578_v54 = vpop.f32.mrb[0].mxu1 }
 0x26c   : > { %v583_v55 = vadd.f32 %v578_v54, %v478_v52  ;;  %v580_v56 = vpop.f32.mrb[1].mxu1 }
 0x26d   : > { %v584_v57 = vadd.f32 %v580_v56, %v479_v53 }
 0x26e   : > { %585 = vst [vmem:[#allocation2] sm:$0xff] %v583_v55 }
 0x26f   : > { %586 = vst [vmem:[#allocation2 + $0x8] sm:$0xff] %v584_v57 }
 0x275   : > { %v591_v58 = vld [vmem:[#allocation2] sm:$0xff] }
 0x276   : > { %v592_v59 = vld [vmem:[#allocation2 + $0x8] sm:$0xff]  ;;  %v593_v60 = vadd.f32 %v591_v58, %v358_v16 }
 0x277   : > { %v594_v61 = vadd.f32 %v592_v59, %v1574_v35 }
 0x278   : > { %595 = vst [vmem:[%s1540_s18] sm:$0xff] %v593_v60 }
 0x279   : > { %596 = vst [vmem:[%s1540_s18 + $0x8] sm:$0xff] %v594_v61 }
 0x27a PF: > { %s1742_s17 = sld [smem:[#allocation14_spill]]  ;;  %s1743_s4 = sld [smem:[#allocation23_spill]] }
 0x27b   : > { %s612_s16 = sshll.u32 %s1540_s18, 4  ;;  %s598_s1 = scalar_lea.sflag [#allocation5], %s1512_s13  ;;  %s613_s16 = int_to_ptr.vmem [resolvable:$true] %s612_s16 }
 0x27c   : > { %s1082_s9 = scalar_lea.vmem %s613_s16, 256  ;;  %p1744_p13 = scmp.ne.s32.totalorder %s1729_s5, 0 }
 0x27d   : > { %p1083_p3 = scmp.ne.s32.totalorder %s613_s16, %s1082_s9  ;;  %s1219_s25 = smov [#allocation9]  }
 0x27e   : > { %s1086_s11 = sshll.u32 %s1219_s25, 4  ;;  %s1087_s11 = int_to_ptr.vmem [resolvable:$false] %s1086_s11 }
 0x27f   : > { %p1084_p9 = pnand %p1083_p3, %p1744_p13  ;;  %s1088_s30 = scalar_lea.vmem %s1087_s11, 512 }
 0x280   : > { %s774_s12 = sshll.u32 %s1742_s17, 8  ;;  %p1089_p11 = scmp.lt.s32.totalorder %s613_s16, %s1087_s11 }
 0x281   : > { %s1636_s24 = scalar_lea.hbm %s1743_s4, %s774_s12  ;;  %p1085_p12 = pneg %p1084_p9 }
 0x282   : > { %p1090_p2 = scmp.lt.s32.totalorder %s1088_s30, %s1082_s9 }
 0x284   : > { %p1091_p1 = por %p1090_p2, %p1089_p11 }
 0x286   : > { %p1092_p5 = pnand %p1091_p1, %p1085_p12 }
 0x288   : > { %1095 = shalt.err (!%p1092_p5)
}
 0x289   : > { %s1096_s13 = scalar_lea.hbm %s1636_s24, 256  ;;  %s1100_s29 = scalar_lea.hbm %s1743_s4, 512 }
 0x28a   : > { %p1097_p7 = scmp.ne.s32.totalorder %s1636_s24, %s1096_s13  ;;  %p1101_p10 = scmp.lt.u32.totalorder %s1636_s24, %s1743_s4 }
 0x28b   : > { %p1102_p6 = scmp.lt.u32.totalorder %s1100_s29, %s1096_s13  ;;  %p1104_p3 = scmp.lt.u32.totalorder %s1096_s13, %s1636_s24 }
 0x28c   : > { %p1098_p8 = pnand %p1097_p7, %p1744_p13 }
 0x28d   : > { %p1103_p0 = por %p1102_p6, %p1101_p10 }
 0x28e   : > { %p1099_p4 = pneg %p1098_p8 }
 0x28f   : > { %p1105_p9 = por %p1104_p3, %p1103_p0 }
 0x291   : > { %p1106_p12 = pnand %p1105_p9, %p1099_p4 }
 0x293   : > { %1109 = shalt.err (!%p1106_p12)
}
 0x294   : > { %880 = dma.vmem_to_hbm [thread:$0]  (%p1744_p13), %s613_s16, 256, %s1636_s24, %s598_s1  }
 0x295 PF: > { %p897_p11 = scmp.ge.s32.totalorder %s1208_s28, 2  ;;  %s624_s7 = sand.u32 1, %s1180_s21  }
 0x296   : > { %p1745_p2 = scmp.ne.s32.totalorder %s1730_s6, 0  ;;  %s625_s27 = scalar_lea.sflag [#allocation5], %s624_s7 }
 0x298   : > { %p893_p1 = pnand %p897_p11, %p1745_p2 }
 0x29a   : > { %1163 = dma.done.wait (!%p893_p1), %s625_s27, 256  }
 0x29b   : > { %1165 = vsyncadd (!%p893_p1), %s625_s27, 4294967040  ;;  %s24_s28 = sadd.s32 1, %s1208_s28   ;;  %s1746_s8 = sld [smem:[#allocation18_spill]] }
 0x29c   : > { %p21_p5 = scmp.ge.s32.totalorder %s24_s28, 6   ;;  %s1747_s5 = sld [smem:[#allocation13_spill]] }
 0x29d   : > { %s1748_s23 = sld [smem:[#allocation19_spill]]  ;;  %s1749_s25 = sld [smem:[#allocation15_spill]] }
 0x29e   : > { %s1750_s17 = sld [smem:[#allocation16_spill]]  ;;  %s1751_s27 = sld [smem:[#allocation17_spill]] }
 0x29f   : > { %s1752_s18 = smov %s1172_s19  ;;  %s1753_s19 = smov %s1176_s20 }
 0x2a0   : > { %s1755_s21 = smov %s1184_s22  ;;  %s1757_s24 = smov %s1200_s26 }
 0x2a1   : > { %s1754_s20 = smov %s1746_s8  ;;  %23 = sbr.rel (!%p21_p5) target bundleno = 16 (0x10), region = 120 }
 0x2a2   : > { %s1756_s22 = smov %s1747_s5 }
 0x2a4   : > { %s1758_s26 = smov %s1750_s17 }
 0x2a8   :  { %630 = vsyncpa [#allocation4], 1 }
 0x2a9   :  { %632 = vsyncpa [#allocation4 + $0x1], 1 }
 0x2aa   :  { %633 = vsyncpa [#allocation7], 1 }
 0x2ab   :  { %635 = vsyncpa [#allocation7 + $0x1], 1 }
 0x2ac   :  { %636 = vsyncpa [#allocation5], 1 }
 0x2ad   :  { %638 = vsyncpa [#allocation5 + $0x1], 1 }

</bundles_post_ra>
